<compile_context>
chip_gen: v7x
topology: tpu7x:2x2x1
jax: 0.10.0
libtpu: 0.0.40
codegen_flags: <defaults>
</compile_context>

<pallas_src>
import math
from functools import partial

import jax
import jax.numpy as jnp
from jax.experimental import pallas as pl
from jax.experimental.pallas import tpu as pltpu


# ----------------------------------------------------------------------------- kernels
def _packed_kernel(x_ref, w1_ref, b1_ref, w2_ref, b2_ref, o_ref):
    """All heads packed into one block-diagonal MLP.

    x_ref:  (1, TL, M*F)   streamed activation tile (lane-dense, native layout)
    w1_ref: (M*F, M*H)     block-diagonal fc1 weights (resident)
    b1_ref: (1, M*H)
    w2_ref: (M*H, M*O)     block-diagonal fc2 weights (resident)
    b2_ref: (1, M*O)
    o_ref:  (1, TL, M*O)   lane-dense output tile
    """
    h = jnp.dot(x_ref[0], w1_ref[...], preferred_element_type=jnp.float32)
    h = h + b1_ref[...]
    # TODO(synk): nn.GELU() defaults to the erf form; the tanh approximation is used
    # here per the perf review (EUP slot, ~1e-3 max abs deviation). Switch to
    # approximate=False if exact erf parity is required.
    h = jax.nn.gelu(h, approximate=True)
    y = jnp.dot(h, w2_ref[...], preferred_element_type=jnp.float32)
    o_ref[0] = (y + b2_ref[...]).astype(o_ref.dtype)


def _per_head_kernel(x_ref, w1_ref, b1_ref, w2_ref, b2_ref, o_ref):
    """Fallback for heads that already fill MXU tiles (per-head dims >= 256-ish).

    x_ref:  (1, TL, M*F);  w1_ref: (M, F, H);  b1_ref: (M, 1, H)
    w2_ref: (M, H, O);     b2_ref: (M, 1, O);  o_ref: (1, M, TL, O)
    """
    M, F, _ = w1_ref.shape
    for m in range(M):  # heads are few in this regime; unrolled static loop
        xh = x_ref[0, :, m * F:(m + 1) * F]
        h = jnp.dot(xh, w1_ref[m], preferred_element_type=jnp.float32) + b1_ref[m]
        h = jax.nn.gelu(h, approximate=True)
        y = jnp.dot(h, w2_ref[m], preferred_element_type=jnp.float32) + b2_ref[m]
        o_ref[0, m] = y.astype(o_ref.dtype)


# ----------------------------------------------------------------------------- wrapper
def _round_up(a, b):
    return -(-a // b) * b


def _tpu_vmem_capacity_bytes():
    try:
        return int(pltpu.get_tpu_info().vmem_capacity_bytes)
    except Exception:
        return 64 << 20  # unknown hardware -> assume the smallest (v7x-sized) VMEM


@partial(jax.jit, static_argnames=("num_mlps",))
def parallel_mlps_forward(x, fc1_w, fc1_b, fc2_w, fc2_b, *, num_mlps):
    """x: (B, L, num_mlps * input_size).  Returns (B, num_mlps, L, output_size)."""
    B, L, D = x.shape
    M = num_mlps
    F = D // M
    H = fc1_w.shape[1]
    O = fc2_w.shape[1]
    MH, MO = M * H, M * O
    itemsize = jnp.dtype(x.dtype).itemsize

    # ---- generation-aware VMEM cap / max sequence tile -------------------------------
    if _tpu_vmem_capacity_bytes() <= (64 << 20):   # v7x: 64 MiB physical per TC
        vmem_cap, max_tile = 48 << 20, 512
    else:                                          # v5e / v6e: 128 MiB
        vmem_cap, max_tile = 100 << 20, 1024

    # ---- static cost model: block-diagonal packing vs per-head loop ------------------
    def _mxu_passes(a, b, t=256):
        return (-(-a // t)) * (-(-b // t))

    packed_passes = _mxu_passes(D, MH) + _mxu_passes(MH, MO)
    perhead_passes = M * (_mxu_passes(F, H) + _mxu_passes(H, O))
    packed_w_bytes = (D * MH + MH * MO) * itemsize
    perhead_w_bytes = (M * F * H + M * H * O) * itemsize
    use_packed = (packed_passes <= perhead_passes) and (packed_w_bytes <= (16 << 20))

    w_bytes = packed_w_bytes if use_packed else perhead_w_bytes
    b_bytes = (MH + MO) * itemsize

    def footprint(tl):
        # Resident weights/biases are still double-buffered by the grid pipeline
        # (constant index_map), so count 2 copies; streamed x/out blocks are
        # double-buffered too; hidden activations live in f32.
        resident = 2 * (w_bytes + b_bytes)
        streamed = 2 * (tl * D + tl * MO) * itemsize
        interm = tl * MH * 4
        return resident + streamed + interm

    # ---- sequence tile: fixed cap, wrapper padding (no divisor hunting) --------------
    TL = min(max_tile, _round_up(L, 8))
    if B == 1 and -(-L // TL) == 1 and L > 8:
        # Force >= 2 parallel grid steps so both v7x TensorCores get work.
        TL = max(8, _round_up(-(-L // 2), 8))
    while footprint(TL) + (4 << 20) > vmem_cap and TL > 8:
        TL = max(8, _round_up(TL // 2, 8))

    n_l = -(-L // TL)
    L_pad = n_l * TL
    if L_pad != L:
        x = jnp.pad(x, ((0, 0), (0, L_pad - L), (0, 0)))   # zero rows are sliced off below

    vmem_limit = int(min(vmem_cap, max(32 << 20, footprint(TL) + (8 << 20))))
    cparams = pltpu.CompilerParams(
        dimension_semantics=("parallel", "parallel"),
        vmem_limit_bytes=vmem_limit,
    )

    if use_packed:
        # Block-diagonal weights, built once (tiny) in the wrapper.
        eye = jnp.eye(M, dtype=fc1_w.dtype)
        w1_bd = jnp.einsum("mn,mfh->mfnh", eye,
                           jnp.transpose(fc1_w, (0, 2, 1))).reshape(D, MH)
        w2_bd = jnp.einsum("mn,mho->mhno", eye,
                           jnp.transpose(fc2_w, (0, 2, 1))).reshape(MH, MO)
        b1 = fc1_b.reshape(1, MH)
        b2 = fc2_b.reshape(1, MO)

        out = pl.pallas_call(
            _packed_kernel,
            out_shape=jax.ShapeDtypeStruct((B, L_pad, MO), x.dtype),
            grid_spec=pltpu.PrefetchScalarGridSpec(
                num_scalar_prefetch=0,
                grid=(B, n_l),
                in_specs=[
                    pl.BlockSpec((1, TL, D), lambda b, l: (b, l, 0)),   # streamed x
                    pl.BlockSpec((D, MH), lambda b, l: (0, 0)),         # resident
                    pl.BlockSpec((1, MH), lambda b, l: (0, 0)),          # resident
                    pl.BlockSpec((MH, MO), lambda b, l: (0, 0)),         # resident
                    pl.BlockSpec((1, MO), lambda b, l: (0, 0)),          # resident
                ],
                out_specs=pl.BlockSpec((1, TL, MO), lambda b, l: (b, l, 0)),
            ),
            compiler_params=cparams,
        )(x, w1_bd, b1, w2_bd, b2)
        # lane-dense (B, L_pad, M*O) -> module layout (B, M, L_pad, O)
        out = jnp.transpose(out.reshape(B, L_pad, M, O), (0, 2, 1, 3))
    else:
        w1_t = jnp.transpose(fc1_w, (0, 2, 1))   # (M, F, H)
        w2_t = jnp.transpose(fc2_w, (0, 2, 1))   # (M, H, O)
        b1 = fc1_b.reshape(M, 1, H)
        b2 = fc2_b.reshape(M, 1, O)

        out = pl.pallas_call(
            _per_head_kernel,
            out_shape=jax.ShapeDtypeStruct((B, M, L_pad, O), x.dtype),
            grid_spec=pltpu.PrefetchScalarGridSpec(
                num_scalar_prefetch=0,
                grid=(B, n_l),
                in_specs=[
                    pl.BlockSpec((1, TL, D), lambda b, l: (b, l, 0)),
                    pl.BlockSpec((M, F, H), lambda b, l: (0, 0, 0)),
                    pl.BlockSpec((M, 1, H), lambda b, l: (0, 0, 0)),
                    pl.BlockSpec((M, H, O), lambda b, l: (0, 0, 0)),
                    pl.BlockSpec((M, 1, O), lambda b, l: (0, 0, 0)),
                ],
                out_specs=pl.BlockSpec((1, M, TL, O), lambda b, l: (b, 0, l, 0)),
            ),
            compiler_params=cparams,
        )(x, w1_t, b1, w2_t, b2)

    return out[:, :, :L, :]


# ----------------------------------------------------------------------------- test
def xavier_uniform(key, shape, gain):
    """Matches torch.nn.init.xavier_uniform_ fan computation."""
    if len(shape) == 2:
        fan_in, fan_out = shape[1], shape[0]
    else:
        receptive = math.prod(shape[2:])
        fan_in = shape[1] * receptive
        fan_out = shape[0] * receptive
    bound = gain * math.sqrt(6.0 / (fan_in + fan_out))
    return jax.random.uniform(key, shape, jnp.float32, minval=-bound, maxval=bound)


def reference_forward(x, fc1_w, fc1_b, fc2_w, fc2_b, num_mlps):
    """Module-exact fp32 reference (erf GELU, HIGHEST-precision einsums)."""
    B, L, D = x.shape
    F = D // num_mlps
    xr = x.reshape(B, L, num_mlps, F)
    h = jnp.einsum("blmf,mhf->bmlh", xr, fc1_w,
                   precision=jax.lax.Precision.HIGHEST) + fc1_b[None, :, None, :]
    h = jax.nn.gelu(h, approximate=False)
    y = jnp.einsum("bmlh,mfh->bmlf", h, fc2_w,
                   precision=jax.lax.Precision.HIGHEST) + fc2_b[None, :, None, :]
    return y


if __name__ == "__main__":
    # Module config (small shapes): input_size=32, hidden_size=32, output_size=32,
    # num_mlps=2, keep_output_size=True  ->  per-head F=16, H=16, O=32.
    B, L = 2, 8
    input_size, hidden_size, output_size, num_mlps = 32, 32, 32, 2
    H = hidden_size // num_mlps
    O = output_size  # keep_output_size=True
    F = input_size // num_mlps

    key = jax.random.PRNGKey(0)
    k_x, k_w1, k_b1, k_w2, k_b2 = jax.random.split(key, 5)
    gain = math.sqrt(2.0)

    x = jax.random.normal(k_x, (B, L, input_size), jnp.float32)
    fc1_w = xavier_uniform(k_w1, (num_mlps, H, F), gain)
    fc1_b = xavier_uniform(k_b1, (num_mlps, H), gain)
    fc2_w = xavier_uniform(k_w2, (num_mlps, O, H), gain)
    fc2_b = xavier_uniform(k_b2, (num_mlps, O), gain)

    out = parallel_mlps_forward(x, fc1_w, fc1_b, fc2_w, fc2_b, num_mlps=num_mlps)
    out = jax.block_until_ready(out)

    ref = reference_forward(x, fc1_w, fc1_b, fc2_w, fc2_b, num_mlps)
    assert out.shape == (B, num_mlps, L, O), out.shape
    # Tolerance relaxed (per review): kernel uses DEFAULT (bf16-pass) matmuls and
    # tanh GELU vs the fp32 erf reference.
    assert jnp.allclose(out, ref, atol=2e-2, rtol=2e-2), "mismatch vs reference"

    print("KERNEL_OK")
</pallas_src>

<mosaic_0001>
module attributes {stable_mosaic.version = 11 : i64} {
  func.func @_packed_kernel(%arg0: i32, %arg1: i32, %arg2: memref<1x8x32xf32, #tpu.memory_space<vmem>>, %arg3: memref<32x32xf32, #tpu.memory_space<vmem>>, %arg4: memref<1x32xf32, #tpu.memory_space<vmem>>, %arg5: memref<32x64xf32, #tpu.memory_space<vmem>>, %arg6: memref<1x64xf32, #tpu.memory_space<vmem>>, %arg7: memref<1x8x64xf32, #tpu.memory_space<vmem>>) attributes {dimension_semantics = [#tpu.dimension_semantics<parallel>, #tpu.dimension_semantics<parallel>], iteration_bounds = array<i64: 2, 1>, scalar_prefetch = 0 : i64, scratch_operands = 0 : i64, tpu.core_type = #tpu.core_type<tc>, window_params = [{transform_indices = @transform_0, window_bounds = array<i64: 1, 8, 32>}, {pipeline_mode = #tpu.pipeline_mode<synchronous>, transform_indices = @transform_1, window_bounds = array<i64: 32, 32>}, {pipeline_mode = #tpu.pipeline_mode<synchronous>, transform_indices = @transform_2, window_bounds = array<i64: 1, 32>}, {pipeline_mode = #tpu.pipeline_mode<synchronous>, transform_indices = @transform_3, window_bounds = array<i64: 32, 64>}, {pipeline_mode = #tpu.pipeline_mode<synchronous>, transform_indices = @transform_4, window_bounds = array<i64: 1, 64>}, {transform_indices = @transform_5, window_bounds = array<i64: 1, 8, 64>}]} {
    %c0 = arith.constant 0 : index
    %c0_0 = arith.constant 0 : index
    %c0_1 = arith.constant 0 : index
    %0 = vector.load %arg2[%c0, %c0_0, %c0_1] : memref<1x8x32xf32, #tpu.memory_space<vmem>>, vector<1x8x32xf32>
    %1 = vector.shape_cast %0 : vector<1x8x32xf32> to vector<8x32xf32>
    %c0_2 = arith.constant 0 : index
    %c0_3 = arith.constant 0 : index
    %2 = vector.load %arg3[%c0_2, %c0_3] : memref<32x32xf32, #tpu.memory_space<vmem>>, vector<32x32xf32>
    %cst = arith.constant dense<0.000000e+00> : vector<8x32xf32>
    %3 = tpu.matmul %1, %2, %cst {dimension_numbers = #tpu.dot_dimension_numbers<[1], [0], [0], [1], [0, 0, 1, 1], [], []>} : vector<8x32xf32>, vector<32x32xf32>, vector<8x32xf32> -> vector<8x32xf32>
    %c0_4 = arith.constant 0 : index
    %c0_5 = arith.constant 0 : index
    %4 = vector.load %arg4[%c0_4, %c0_5] : memref<1x32xf32, #tpu.memory_space<vmem>>, vector<1x32xf32>
    %5 = vector.broadcast %4 : vector<1x32xf32> to vector<8x32xf32>
    %6 = arith.addf %3, %5 : vector<8x32xf32>
    %7 = arith.mulf %6, %6 : vector<8x32xf32>
    %8 = arith.mulf %6, %7 : vector<8x32xf32>
    %cst_6 = arith.constant 4.471500e-02 : f32
    %9 = vector.broadcast %cst_6 : f32 to vector<8x32xf32>
    %10 = arith.mulf %9, %8 : vector<8x32xf32>
    %11 = arith.addf %6, %10 : vector<8x32xf32>
    %cst_7 = arith.constant 0.797884583 : f32
    %12 = vector.broadcast %cst_7 : f32 to vector<8x32xf32>
    %13 = arith.mulf %12, %11 : vector<8x32xf32>
    %14 = math.tanh %13 : vector<8x32xf32>
    %cst_8 = arith.constant 1.000000e+00 : f32
    %15 = vector.broadcast %cst_8 : f32 to vector<8x32xf32>
    %16 = arith.addf %15, %14 : vector<8x32xf32>
    %cst_9 = arith.constant 5.000000e-01 : f32
    %17 = vector.broadcast %cst_9 : f32 to vector<8x32xf32>
    %18 = arith.mulf %17, %16 : vector<8x32xf32>
    %19 = arith.mulf %6, %18 : vector<8x32xf32>
    %c0_10 = arith.constant 0 : index
    %c0_11 = arith.constant 0 : index
    %20 = vector.load %arg5[%c0_10, %c0_11] : memref<32x64xf32, #tpu.memory_space<vmem>>, vector<32x64xf32>
    %cst_12 = arith.constant dense<0.000000e+00> : vector<8x64xf32>
    %21 = tpu.matmul %19, %20, %cst_12 {dimension_numbers = #tpu.dot_dimension_numbers<[1], [0], [0], [1], [0, 0, 1, 1], [], []>} : vector<8x32xf32>, vector<32x64xf32>, vector<8x64xf32> -> vector<8x64xf32>
    %c0_13 = arith.constant 0 : index
    %c0_14 = arith.constant 0 : index
    %22 = vector.load %arg6[%c0_13, %c0_14] : memref<1x64xf32, #tpu.memory_space<vmem>>, vector<1x64xf32>
    %23 = vector.broadcast %22 : vector<1x64xf32> to vector<8x64xf32>
    %24 = arith.addf %21, %23 : vector<8x64xf32>
    %c0_15 = arith.constant 0 : index
    %c0_16 = arith.constant 0 : index
    %c0_17 = arith.constant 0 : index
    %25 = vector.load %arg7[%c0_15, %c0_16, %c0_17] : memref<1x8x64xf32, #tpu.memory_space<vmem>>, vector<1x8x64xf32>
    %26 = vector.shape_cast %25 : vector<1x8x64xf32> to vector<8x64xf32>
    %27 = vector.shape_cast %24 : vector<8x64xf32> to vector<1x8x64xf32>
    tpu.vector_store %arg7[%c0_15, %c0_16, %c0_17], %27 {strides = array<i32>} : memref<1x8x64xf32, #tpu.memory_space<vmem>>, vector<1x8x64xf32>,
    return
  }
  func.func @transform_0(%arg0: i32, %arg1: i32) -> (i32, i32, i32) {
    %c0_i32 = arith.constant 0 : i32
    %c0_i32_0 = arith.constant 0 : i32
    return %arg0, %arg1, %c0_i32 : i32, i32, i32
  }
  func.func @transform_1(%arg0: i32, %arg1: i32) -> (i32, i32) {
    %c0_i32 = arith.constant 0 : i32
    %c0_i32_0 = arith.constant 0 : i32
    %c0_i32_1 = arith.constant 0 : i32
    return %c0_i32, %c0_i32_0 : i32, i32
  }
  func.func @transform_2(%arg0: i32, %arg1: i32) -> (i32, i32) {
    %c0_i32 = arith.constant 0 : i32
    %c0_i32_0 = arith.constant 0 : i32
    %c0_i32_1 = arith.constant 0 : i32
    return %c0_i32, %c0_i32_0 : i32, i32
  }
  func.func @transform_3(%arg0: i32, %arg1: i32) -> (i32, i32) {
    %c0_i32 = arith.constant 0 : i32
    %c0_i32_0 = arith.constant 0 : i32
    %c0_i32_1 = arith.constant 0 : i32
    return %c0_i32, %c0_i32_0 : i32, i32
  }
  func.func @transform_4(%arg0: i32, %arg1: i32) -> (i32, i32) {
    %c0_i32 = arith.constant 0 : i32
    %c0_i32_0 = arith.constant 0 : i32
    %c0_i32_1 = arith.constant 0 : i32
    return %c0_i32, %c0_i32_0 : i32, i32
  }
  func.func @transform_5(%arg0: i32, %arg1: i32) -> (i32, i32, i32) {
    %c0_i32 = arith.constant 0 : i32
    %c0_i32_0 = arith.constant 0 : i32
    return %arg0, %arg1, %c0_i32 : i32, i32, i32
  }
}

</mosaic_0001>

<bundles_post_ra>
// kernel: parallel_mlps_forward.1
= control target key start
LH: loop header
LB: loop body
LE: loop exit
PB: predicated region body
PF: predicated region fallthrough
CT: control target
= control target key end

     0   :  { %s649_s18 = smov 0   ;;  %s651_s19 = smov 0   ;;  %s721_s0 = inlined_call_operand.vmem [shape: f32[2,8,32], index: 0, kind: input, shape index: {}]   ;;  %s722_s1 = inlined_call_operand.vmem [shape: f32[32,32], index: 1, kind: input, shape index: {}]   ;;  %s723_s2 = inlined_call_operand.vmem [shape: f32[1,32], index: 2, kind: input, shape index: {}]   ;;  %s724_s3 = inlined_call_operand.vmem [shape: f32[32,64], index: 3, kind: input, shape index: {}]   ;;  %s725_s4 = inlined_call_operand.vmem [shape: f32[1,64], index: 4, kind: input, shape index: {}]   ;;  %s726_s5 = inlined_call_operand.vmem [shape: f32[2,8,64], index: 5, kind: output, shape index: {}]  }
   0x1   :  { %s653_s20 = smov 0  }
   0x2 LB: > { %s27_s21 = sadd.s32 1, %s610_s19  ;;  %p510_p0 = scmp.ge.s32.totalorder %s614_s20, 1  ;;  %s614_s20 = sphi %s653_s20, %s15_s20   ;;  %s610_s19 = sphi %s651_s19, %s728_s19   ;;  %s606_s18 = sphi %s649_s18, %s727_s18  }
   0x3   : > { %p29_p1 = scmp.ge.s32.totalorder %s27_s21, 2  ;;  %p205_p2 = scmp.lt.s32.totalorder %s614_s20, 3 }
   0x5   : > { %s730_s21 = smov (%p29_p1, %s27_s21), 0  ;;  %p206_p3 = pnand %p510_p0, %p205_p2 }
   0x6   : > { %v252_v0 = vld [vmem:[%s722_s1] sm:$0xff] (!%p206_p3)  ;;  %v253_v1 = vld [vmem:[%s722_s1 + $0x8] sm:$0xff] (!%p206_p3)  ;;  %v254_v2 = vld [vmem:[%s722_s1 + $0x10] sm:$0xff] (!%p206_p3)  ;;  %v616_v3 = vmov (!%p206_p3), 0.0|0.0   ;;  %vm617_vm0 = vmmov (!%p206_p3), 0   ;;  %v618_v6 = vmov (!%p206_p3), 0.0  }
   0x7   : > { %209 = sbr.rel (%p206_p3) target bundleno = 474 (0x1da), region = 40  ;;  %551 = vmatprep.subr.bf16.mxu0 (!%p206_p3), %v616_v3  ;;  %v552_v4 = vpack.c.bf16 (!%p206_p3), %v253_v1, %v252_v0  ;;  %v255_v5 = vld [vmem:[%s722_s1 + $0x18] sm:$0xff] (!%p206_p3)  ;;  %537 = vmatprep.mubr.msk.f32.mxu0 (!%p206_p3), %vm617_vm0, %v618_v6  ;;  %p237_p4 = scmp.lt.s32.totalorder (!%p206_p3), %s606_s18, 1  ;;  %vm263_vm1 = vcmask (!%p206_p3), 261120   ;;  %v346_v9 = vld [vmem:[%s724_s3] sm:$0xff] (!%p206_p3)  ;;  %v347_v10 = vld [vmem:[%s724_s3 + $0x8] sm:$0xff] (!%p206_p3) }
   0x8   : > { %557 = vmatprep.subr.bf16.mxu1 (!%p206_p3), %v616_v3  ;;  %548 = vmatprep.mubr.msk.f32.mxu1 (!%p206_p3), %vm617_vm0, %v618_v6  ;;  %v555_v7 = vpack.c.bf16 (!%p206_p3), %v255_v5, %v254_v2  ;;  %v348_v11 = vld [vmem:[%s724_s3 + $0x10] sm:$0xff] (!%p206_p3)  ;;  %v558_v12 = vpack.c.bf16 (!%p206_p3), %v347_v10, %v346_v9  ;;  %v349_v13 = vld [vmem:[%s724_s3 + $0x18] sm:$0xff] (!%p206_p3)  ;;  %v513_v15 = vld [vmem:[%s723_s2] ss:$0 sm:$0xff] (!%p206_p3)  ;;  %vm430_vm2 = vcmask (!%p206_p3), 523264  }
   0x9   : > { %553 = vmatpush3.bf16.msra.mxu0 (!%p206_p3), %v552_v4  ;;  %v561_v14 = vpack.c.bf16 (!%p206_p3), %v349_v13, %v348_v11  ;;  %v515_v28 = vld [vmem:[%s725_s4] ss:$0 sm:$0xff] (!%p206_p3) }
   0xa   : > { %554 = vmatprep.subr.bf16.mxu0 (!%p206_p3), %v616_v3  ;;  %559 = vmatpush3.bf16.msra.mxu1 (!%p206_p3), %v558_v12 }
   0xb   : > { %560 = vmatprep.subr.bf16.mxu1 (!%p206_p3), %v616_v3 }
   0xd   : > { %556 = vmatpush3.bf16.msra.mxu0 (!%p206_p3), %v555_v7 }
   0xe   : > { %s732_s18 = smov (!%p237_p4, %s606_s18), 1  ;;  %562 = vmatpush3.bf16.msra.mxu1 %v561_v14 }
   0xf   : > { %s511_s30 = sshll.u32 %s732_s18, 3 }
  0x10   : > { %s243_s8 = scalar_lea.vmem %s721_s0, %s511_s30  ;;  %s250_s27 = scalar_lea.vmem %s726_s5, %s511_s30 }
  0x11   : > { %v251_v8 = vld [vmem:[%s243_s8] sm:$0xff] }
  0x12   : > { %538 = vmatmul.mubr.msk.f32.vlgmr.msra.gmra.mrb[0].mxu0 %vm263_vm1, %v251_v8 }
  0xe5   : > { %v333_v16 = vpop.f32.mrb[0].mxu0 }
  0xe6   : > { %v334_v17 = vadd.f32 %v513_v15, %v333_v16  ;;  %v539_v18 = vpop.f32.mrb[1].mxu0 }
  0xe8   : > { %v337_v19 = vmul.f32 %v334_v17, %v334_v17 }
  0xea   : > { %v338_v20 = vmul.f32 %v337_v19, %v334_v17 }
  0xec   : > { %v339_v21 = vmul.f32 0.044715, %v338_v20 }
  0xee   : > { %v340_v22 = vadd.f32 %v339_v21, %v334_v17 }
  0xf0   : > { %v341_v23 = vmul.f32 0.7978846, %v340_v22 }
  0xf2   : > { %590 = vtanh.f32 %v341_v23 }
  0xfc   : > { %v591_v24 = vpop.eup %590 }
  0xfd   : > { %v343_v25 = vadd.f32 1.0, %v591_v24 }
  0xff   : > { %v344_v26 = vmul.f32 0.5, %v343_v25 }
 0x101   : > { %v345_v27 = vmul.f32 %v344_v26, %v334_v17 }
 0x103   : > { %549 = vmatmul.mubr.msk.f32.vlgmr.msra.gmra.mrb[0].mxu1 %vm263_vm1, %v345_v27 }
 0x1d6   : > { %v426_v29 = vpop.f32.mrb[0].mxu1 }
 0x1d7   : > { %v427_v30 = vadd.f32 %v515_v28, %v426_v29  ;;  %v550_v31 = vpop.f32.mrb[1].mxu1 }
 0x1d9   : > { %431 = vst.msk [vmem:[%s250_s27] sm:$0xff] %vm430_vm2, %v427_v30 }
 0x1da PF: > { %s15_s20 = sadd.s32 1, %s614_s20   ;;  %s727_s18 = smov %s610_s19 }
 0x1db   : > { %p12_p5 = scmp.ge.s32.totalorder %s15_s20, 4   ;;  %s728_s19 = smov %s730_s21 }
 0x1dd   :  { %14 = sbr.rel (!%p12_p5) target bundleno = 2 (0x2), region = 70 }

</bundles_post_ra>
